<compile_context>
chip_gen: v6e
topology: v6e:2x2x1
jax: 0.10.0
libtpu: 0.0.40
codegen_flags: <defaults>
</compile_context>

<pallas_src>
import jax
import jax.numpy as jnp
from jax.experimental import pallas as pl
from jax.experimental.pallas import tpu as pltpu

HIDDEN = 768       # BERT pooler_output width
FC1 = 512          # fc1 out
NUM_CLASSES = 6    # fc2 out (logical)
CLS_PAD = 128      # fc2 out padded to a full lane group
NEG_BIG = -1e30    # mask value for padded logit columns


def _round_up(x, m):
    return (x + m - 1) // m * m


def head_kernel(x_ref, w1_ref, b1_ref, w2_ref, b2_ref, o_ref):
    # x:  [TILE_B, 768] bf16     w1: [768, 512] bf16   b1: [1, 512] f32
    # w2: [512, 128]   f32(pad)  b2: [1, 128]  f32(pad)
    # o:  [TILE_B, 128] f32 (padded class columns hold junk; sliced off outside)

    # fc1 + ReLU (MXU, f32 accumulation)
    h = jnp.dot(x_ref[...], w1_ref[...], preferred_element_type=jnp.float32)
    h = jnp.maximum(h + b1_ref[...], 0.0)

    # TODO(synk): nn.Dropout(0.1) is identity in eval/inference mode; not sampled here.

    # fc2 (class-padded to 128 lanes)
    logits = jnp.dot(h, w2_ref[...], preferred_element_type=jnp.float32) + b2_ref[...]

    # mask padded class columns so they do not perturb the normalizer
    col = jax.lax.broadcasted_iota(jnp.int32, logits.shape, 1)
    logits = jnp.where(col < NUM_CLASSES, logits, NEG_BIG)

    # LogSoftmax over class dim (dim=1), numerically stable
    m = jnp.max(logits, axis=-1, keepdims=True)
    z = logits - m
    lse = jnp.log(jnp.sum(jnp.exp(z), axis=-1, keepdims=True))
    o_ref[...] = z - lse


def bert_arch_head(cls_hs, w1, b1, w2, b2, *, tile_b=128):
    """fc1 -> ReLU -> (dropout=id) -> fc2 -> LogSoftmax.  Returns [B, 6] f32."""
    B = cls_hs.shape[0]

    # batch tile: multiple of 16 (safe sublane granularity for bf16 blocks)
    tb = tile_b if B >= tile_b else _round_up(B, 16)
    b_pad = _round_up(B, tb)
    grid = b_pad // tb

    # activations & heavy weight in bf16 (halves the dominant DMA bytes)
    x = cls_hs.astype(jnp.bfloat16)
    if b_pad != B:
        x = jnp.pad(x, ((0, b_pad - B), (0, 0)))
    w1b = w1.astype(jnp.bfloat16)
    b1f = b1.astype(jnp.float32).reshape(1, FC1)

    # class-pad fc2 to a lane-dense 128-wide output
    w2p = jnp.pad(w2.astype(jnp.float32), ((0, 0), (0, CLS_PAD - NUM_CLASSES)))
    b2p = jnp.pad(b2.astype(jnp.float32).reshape(1, NUM_CLASSES),
                  ((0, 0), (0, CLS_PAD - NUM_CLASSES)))

    grid_spec = pltpu.PrefetchScalarGridSpec(
        num_scalar_prefetch=0,
        grid=(grid,),
        in_specs=[
            pl.BlockSpec((tb, HIDDEN), lambda i: (i, 0)),       # x: tiled over batch
            pl.BlockSpec((HIDDEN, FC1), lambda i: (0, 0)),      # w1: resident
            pl.BlockSpec((1, FC1), lambda i: (0, 0)),           # b1: resident
            pl.BlockSpec((FC1, CLS_PAD), lambda i: (0, 0)),     # w2: resident
            pl.BlockSpec((1, CLS_PAD), lambda i: (0, 0)),       # b2: resident
        ],
        out_specs=pl.BlockSpec((tb, CLS_PAD), lambda i: (i, 0)),
    )

    out = pl.pallas_call(
        head_kernel,
        out_shape=jax.ShapeDtypeStruct((b_pad, CLS_PAD), jnp.float32),
        grid_spec=grid_spec,
        compiler_params=pltpu.CompilerParams(
            dimension_semantics=("parallel",)),
    )(x, w1b, b1f, w2p, b2p)

    # drop batch padding and padded class columns
    return out[:B, :NUM_CLASSES]


def synthetic_bert_pooler_output(sent_id, mask, emb, wp, bp):
    # Deterministic stand-in for the injected `bert` backbone's pooler_output.
    # TODO(synk): full pretrained BERT encoder is an external module; not translated.
    x = emb[sent_id]                                                 # [B, S, 768]
    m = mask.astype(jnp.float32)[..., None]                          # [B, S, 1]
    pooled = (x * m).sum(axis=1) / jnp.maximum(m.sum(axis=1), 1.0)   # [B, 768]
    return jnp.tanh(pooled @ wp + bp)                                # [B, 768]


def bert_arch_forward(sent_id, mask, params):
    cls_hs = synthetic_bert_pooler_output(
        sent_id, mask, params["emb"], params["wp"], params["bp"])
    return bert_arch_head(cls_hs, params["w1"], params["b1"],
                          params["w2"], params["b2"])


def init_params(key, vocab=100):
    ks = jax.random.split(key, 6)
    scale = 0.02
    return {
        "emb": scale * jax.random.normal(ks[0], (vocab, HIDDEN), jnp.float32),
        "wp": scale * jax.random.normal(ks[1], (HIDDEN, HIDDEN), jnp.float32),
        "bp": jnp.zeros((HIDDEN,), jnp.float32),
        "w1": scale * jax.random.normal(ks[2], (HIDDEN, FC1), jnp.float32),
        "b1": 0.01 * jnp.ones((1, FC1), jnp.float32),
        "w2": scale * jax.random.normal(ks[3], (FC1, NUM_CLASSES), jnp.float32),
        "b2": 0.01 * jnp.ones((1, NUM_CLASSES), jnp.float32),
    }


if __name__ == "__main__":
    key = jax.random.PRNGKey(0)
    kp, kid, kmask = jax.random.split(key, 3)

    B, S, VOCAB = 2, 8, 100
    params = init_params(kp, vocab=VOCAB)

    sent_id = jax.random.randint(kid, (B, S), 0, VOCAB, dtype=jnp.int32)
    mask = jnp.ones((B, S), dtype=jnp.int32)

    out = bert_arch_forward(sent_id, mask, params)
    out = jax.block_until_ready(out)

    assert out.shape == (B, NUM_CLASSES)
    # log-softmax rows must exponentiate-sum to ~1
    assert jnp.allclose(jnp.exp(out).sum(axis=1), 1.0, atol=1e-3)
    print("KERNEL_OK")
</pallas_src>

<mosaic_0001>
module attributes {stable_mosaic.version = 11 : i64} {
  func.func @head_kernel(%arg0: i32, %arg1: memref<16x768xbf16, #tpu.memory_space<vmem>>, %arg2: memref<768x512xbf16, #tpu.memory_space<vmem>>, %arg3: memref<1x512xf32, #tpu.memory_space<vmem>>, %arg4: memref<512x128xf32, #tpu.memory_space<vmem>>, %arg5: memref<1x128xf32, #tpu.memory_space<vmem>>, %arg6: memref<16x128xf32, #tpu.memory_space<vmem>>) attributes {dimension_semantics = [#tpu.dimension_semantics<parallel>], iteration_bounds = array<i64: 1>, scalar_prefetch = 0 : i64, scratch_operands = 0 : i64, tpu.core_type = #tpu.core_type<tc>, window_params = [{transform_indices = @transform_0, window_bounds = array<i64: 16, 768>}, {pipeline_mode = #tpu.pipeline_mode<synchronous>, transform_indices = @transform_1, window_bounds = array<i64: 768, 512>}, {pipeline_mode = #tpu.pipeline_mode<synchronous>, transform_indices = @transform_2, window_bounds = array<i64: 1, 512>}, {pipeline_mode = #tpu.pipeline_mode<synchronous>, transform_indices = @transform_3, window_bounds = array<i64: 512, 128>}, {pipeline_mode = #tpu.pipeline_mode<synchronous>, transform_indices = @transform_4, window_bounds = array<i64: 1, 128>}, {transform_indices = @transform_5, window_bounds = array<i64: 16, 128>}]} {
    %c0 = arith.constant 0 : index
    %c0_0 = arith.constant 0 : index
    %0 = vector.load %arg1[%c0, %c0_0] : memref<16x768xbf16, #tpu.memory_space<vmem>>, vector<16x768xbf16>
    %c0_1 = arith.constant 0 : index
    %c0_2 = arith.constant 0 : index
    %1 = vector.load %arg2[%c0_1, %c0_2] : memref<768x512xbf16, #tpu.memory_space<vmem>>, vector<768x512xbf16>
    %cst = arith.constant dense<0.000000e+00> : vector<16x512xf32>
    %2 = tpu.matmul %0, %1, %cst {dimension_numbers = #tpu.dot_dimension_numbers<[1], [0], [0], [1], [0, 0, 1, 1], [], []>} : vector<16x768xbf16>, vector<768x512xbf16>, vector<16x512xf32> -> vector<16x512xf32>
    %c0_3 = arith.constant 0 : index
    %c0_4 = arith.constant 0 : index
    %3 = vector.load %arg3[%c0_3, %c0_4] : memref<1x512xf32, #tpu.memory_space<vmem>>, vector<1x512xf32>
    %4 = vector.broadcast %3 : vector<1x512xf32> to vector<16x512xf32>
    %5 = arith.addf %2, %4 : vector<16x512xf32>
    %cst_5 = arith.constant 0.000000e+00 : f32
    %6 = vector.broadcast %cst_5 : f32 to vector<16x512xf32>
    %7 = arith.maximumf %5, %6 : vector<16x512xf32>
    %c0_6 = arith.constant 0 : index
    %c0_7 = arith.constant 0 : index
    %8 = vector.load %arg4[%c0_6, %c0_7] : memref<512x128xf32, #tpu.memory_space<vmem>>, vector<512x128xf32>
    %cst_8 = arith.constant dense<0.000000e+00> : vector<16x128xf32>
    %9 = tpu.matmul %7, %8, %cst_8 {dimension_numbers = #tpu.dot_dimension_numbers<[1], [0], [0], [1], [0, 0, 1, 1], [], []>} : vector<16x512xf32>, vector<512x128xf32>, vector<16x128xf32> -> vector<16x128xf32>
    %c0_9 = arith.constant 0 : index
    %c0_10 = arith.constant 0 : index
    %10 = vector.load %arg5[%c0_9, %c0_10] : memref<1x128xf32, #tpu.memory_space<vmem>>, vector<1x128xf32>
    %11 = vector.broadcast %10 : vector<1x128xf32> to vector<16x128xf32>
    %12 = arith.addf %9, %11 : vector<16x128xf32>
    %13 = tpu.iota {dimensions = array<i32: 1>} : vector<16x128xi32>
    %c6_i32 = arith.constant 6 : i32
    %14 = vector.broadcast %c6_i32 : i32 to vector<16x128xi32>
    %15 = arith.cmpi slt, %13, %14 : vector<16x128xi32>
    %cst_11 = arith.constant -1.000000e+30 : f32
    %16 = vector.broadcast %cst_11 : f32 to vector<16x128xf32>
    %17 = arith.select %15, %12, %16 : vector<16x128xi1>, vector<16x128xf32>
    %cst_12 = arith.constant dense<0xFF800000> : vector<16xf32>
    %18 = vector.multi_reduction <maximumf>, %17, %cst_12 [1] : vector<16x128xf32> to vector<16xf32>
    %19 = vector.shape_cast %18 : vector<16xf32> to vector<16x1xf32>
    %20 = vector.broadcast %19 : vector<16x1xf32> to vector<16x128xf32>
    %21 = arith.subf %17, %20 : vector<16x128xf32>
    %22 = math.exp %21 : vector<16x128xf32>
    %cst_13 = arith.constant dense<0.000000e+00> : vector<16xf32>
    %23 = vector.multi_reduction <add>, %22, %cst_13 [1] : vector<16x128xf32> to vector<16xf32>
    %24 = vector.shape_cast %23 : vector<16xf32> to vector<16x1xf32>
    %25 = math.log %24 : vector<16x1xf32>
    %26 = vector.broadcast %25 : vector<16x1xf32> to vector<16x128xf32>
    %27 = arith.subf %21, %26 : vector<16x128xf32>
    %c0_14 = arith.constant 0 : index
    %c0_15 = arith.constant 0 : index
    %28 = vector.load %arg6[%c0_14, %c0_15] : memref<16x128xf32, #tpu.memory_space<vmem>>, vector<16x128xf32>
    tpu.vector_store %arg6[%c0_14, %c0_15], %27 {strides = array<i32>} : memref<16x128xf32, #tpu.memory_space<vmem>>, vector<16x128xf32>,
    return
  }
  func.func @transform_0(%arg0: i32) -> (i32, i32) {
    %c0_i32 = arith.constant 0 : i32
    %c0_i32_0 = arith.constant 0 : i32
    return %arg0, %c0_i32 : i32, i32
  }
  func.func @transform_1(%arg0: i32) -> (i32, i32) {
    %c0_i32 = arith.constant 0 : i32
    %c0_i32_0 = arith.constant 0 : i32
    %c0_i32_1 = arith.constant 0 : i32
    return %c0_i32, %c0_i32_0 : i32, i32
  }
  func.func @transform_2(%arg0: i32) -> (i32, i32) {
    %c0_i32 = arith.constant 0 : i32
    %c0_i32_0 = arith.constant 0 : i32
    %c0_i32_1 = arith.constant 0 : i32
    return %c0_i32, %c0_i32_0 : i32, i32
  }
  func.func @transform_3(%arg0: i32) -> (i32, i32) {
    %c0_i32 = arith.constant 0 : i32
    %c0_i32_0 = arith.constant 0 : i32
    %c0_i32_1 = arith.constant 0 : i32
    return %c0_i32, %c0_i32_0 : i32, i32
  }
  func.func @transform_4(%arg0: i32) -> (i32, i32) {
    %c0_i32 = arith.constant 0 : i32
    %c0_i32_0 = arith.constant 0 : i32
    %c0_i32_1 = arith.constant 0 : i32
    return %c0_i32, %c0_i32_0 : i32, i32
  }
  func.func @transform_5(%arg0: i32) -> (i32, i32) {
    %c0_i32 = arith.constant 0 : i32
    %c0_i32_0 = arith.constant 0 : i32
    return %arg0, %c0_i32 : i32, i32
  }
}

</mosaic_0001>

<bundles_post_ra>
// kernel: tpu_custom_call.1
= control target key start
LH: loop header
LB: loop body
LE: loop exit
PB: predicated region body
PF: predicated region fallthrough
CT: control target
= control target key end

     0   :  { %10 = vsyncpa [#allocation3], 0  ;;  %s2603_s0 = inlined_call_operand.hbm [shape: bf16[16,768], index: 0, kind: input, shape index: {}]   ;;  %s2604_s1 = inlined_call_operand.hbm [shape: bf16[768,512], index: 1, kind: input, shape index: {}]   ;;  %s2605_s2 = inlined_call_operand.hbm [shape: f32[1,512], index: 2, kind: input, shape index: {}]   ;;  %s2606_s3 = inlined_call_operand.hbm [shape: f32[512,128], index: 3, kind: input, shape index: {}]   ;;  %s2607_s4 = inlined_call_operand.vmem [shape: f32[1,128], index: 4, kind: input, shape index: {}]   ;;  %s2608_s5 = inlined_call_operand.hbm [shape: f32[16,128], index: 5, kind: output, shape index: {}]  }
   0x1   :  { %11 = vsyncpa [#allocation6], 0 }
   0x2   :  { %12 = vsyncpa [#allocation9], 0 }
   0x3   :  { %13 = vsyncpa [#allocation4], 0  ;;  %s2516_s18 = smov [#allocation5]  }
   0x4   :  { %s31_s19 = sshll.u32 %s2516_s18, 4  ;;  %s32_s19 = int_to_ptr.vmem [resolvable:$true] %s31_s19 }
   0x5   :  { %s2416_s20 = scalar_lea.vmem %s32_s19, 24576  ;;  %p2421_p1 = scmp.lt.s32.totalorder %s32_s19, %s32_s19 }
   0x6   :  { %p2417_p0 = scmp.ne.s32.totalorder %s32_s19, %s2416_s20  ;;  %p2422_p2 = scmp.lt.s32.totalorder %s2416_s20, %s2416_s20 }
   0x8   :  { %p2423_p3 = por %p2422_p2, %p2421_p1 }
   0xa   :  { %p2424_p4 = pnand %p2423_p3, %p2417_p0 }
   0xc   :  { %2427 = shalt.err (!%p2424_p4)
}
   0xd   :  { %s2517_s21 = smov 256   ;;  %s2518_s22 = smov 16  }
   0xe   :  { %37 = dma.hbm_to_vmem [thread:$0]  %s2604_s1, 24576, %s32_s19, [#allocation6], %s2517_s21, %s2517_s21, %s2518_s22  }
   0xf   :  { %s2519_s25 = smov [#allocation2]  }
  0x10   :  { %s19_s26 = sshll.u32 %s2519_s25, 4  ;;  %s20_s26 = int_to_ptr.vmem [resolvable:$true] %s19_s26 }
  0x11   :  { %s2436_s27 = scalar_lea.vmem %s20_s26, 768  ;;  %p2441_p6 = scmp.lt.s32.totalorder %s20_s26, %s20_s26 }
  0x12   :  { %p2437_p5 = scmp.ne.s32.totalorder %s20_s26, %s2436_s27  ;;  %p2442_p7 = scmp.lt.s32.totalorder %s2436_s27, %s2436_s27 }
  0x14   :  { %p2443_p8 = por %p2442_p7, %p2441_p6 }
  0x16   :  { %p2444_p9 = pnand %p2443_p8, %p2437_p5 }
  0x18   :  { %2447 = shalt.err (!%p2444_p9)
}
  0x19   :  { %s2520_s28 = smov 384   ;;  %s2521_s29 = smov 24  }
  0x1a   :  { %25 = dma.hbm_to_vmem [thread:$0]  %s2603_s0, 768, %s20_s26, [#allocation3], %s2520_s28, %s2520_s28, %s2521_s29  }
  0x1b   :  { %s2522_s7 = smov [#allocation7]   ;;  %s2523_s9 = smov [#allocation8]  }
  0x1c   :  { %s44_s8 = sshll.u32 %s2522_s7, 4  ;;  %s53_s1 = sshll.u32 %s2523_s9, 4  ;;  %s45_s8 = int_to_ptr.vmem [resolvable:$true] %s44_s8  ;;  %s54_s1 = int_to_ptr.vmem [resolvable:$true] %s53_s1 }
  0x1d   :  { %s2456_s10 = scalar_lea.vmem %s45_s8, 64  ;;  %p2461_p11 = scmp.lt.s32.totalorder %s45_s8, %s45_s8 }
  0x1e   :  { %p2457_p10 = scmp.ne.s32.totalorder %s45_s8, %s2456_s10  ;;  %p2462_p12 = scmp.lt.s32.totalorder %s2456_s10, %s2456_s10 }
  0x20   :  { %p2463_p13 = por %p2462_p12, %p2461_p11 }
  0x22   :  { %p2464_p0 = pnand %p2463_p13, %p2457_p10 }
  0x24   :  { %2467 = shalt.err (!%p2464_p0)
}
  0x25   :  { %47 = dma.hbm_to_vmem [thread:$0]  %s2605_s2, 64, %s45_s8, [#allocation6]  }
  0x26   :  { %s2476_s13 = scalar_lea.vmem %s54_s1, 8192  ;;  %p2481_p2 = scmp.lt.s32.totalorder %s54_s1, %s54_s1 }
  0x27   :  { %p2477_p1 = scmp.ne.s32.totalorder %s54_s1, %s2476_s13  ;;  %p2482_p3 = scmp.lt.s32.totalorder %s2476_s13, %s2476_s13 }
  0x29   :  { %p2483_p4 = por %p2482_p3, %p2481_p2 }
  0x2b   :  { %p2484_p5 = pnand %p2483_p4, %p2477_p1 }
  0x2d   :  { %2487 = shalt.err (!%p2484_p5)
}
  0x2e   :  { %s2524_s0 = smov 128   ;;  %s2525_s14 = smov 8  }
  0x2f   :  { %59 = dma.hbm_to_vmem [thread:$0]  %s2606_s3, 8192, %s54_s1, [#allocation9], %s2524_s0, %s2524_s0, %s2525_s14  }
  0x30   :  { %2508 = dma.done.wait [#allocation3], 768  }
  0x31   :  { %2509 = vsyncadd [#allocation3], 4294966528 }
  0x32   :  { %2510 = dma.done.wait [#allocation6], 24640  }
  0x33   :  { %2511 = vsyncadd [#allocation6], 4294942656 }
  0x34   :  { %2512 = dma.done.wait [#allocation9], 8192  }
  0x35   :  { %2513 = vsyncadd [#allocation9], 4294959104  ;;  %v2103_v0 = vld [vmem:[#allocation5 + $0xe4] ss:$16 sps:$4 sm:$0xff]   ;;  %v2107_v2 = vld [vmem:[#allocation5 + $0xe0] ss:$16 sps:$4 sm:$0xff]  }
  0x36   :  { %v2105_v1 = vld [vmem:[#allocation5 + $0x2e4] ss:$16 sps:$4 sm:$0xff]   ;;  %1284 = vmatprep.subr.bf16.mxu0 %v2103_v0  ;;  %v2108_v3 = vld [vmem:[#allocation5 + $0x2e0] ss:$16 sps:$4 sm:$0xff]  }
  0x37   :  { %1327 = vmatprep.subr.bf16.mxu1 %v2105_v1  ;;  %v2109_v4 = vld [vmem:[#allocation5 + $0xc4] ss:$16 sps:$4 sm:$0xff]   ;;  %1285 = vmatpush1.bf16.msra.mxu0 %v2107_v2  ;;  %v2113_v6 = vld [vmem:[#allocation5 + $0xc0] ss:$16 sps:$4 sm:$0xff]  }
  0x38   :  { %1328 = vmatpush1.bf16.msra.mxu1 %v2108_v3  ;;  %v2111_v5 = vld [vmem:[#allocation5 + $0x2c4] ss:$16 sps:$4 sm:$0xff]   ;;  %1286 = vmatprep.subr.bf16.mxu0 %v2109_v4  ;;  %v2114_v7 = vld [vmem:[#allocation5 + $0x2c0] ss:$16 sps:$4 sm:$0xff]   ;;  %v2210_v3 = vld [vmem:[#allocation5 + $0xec] ss:$16 sps:$4 sm:$0xff]  }
  0x39   :  { %1329 = vmatprep.subr.bf16.mxu1 %v2111_v5  ;;  %v2115_v8 = vld [vmem:[#allocation5 + $0xa4] ss:$16 sps:$4 sm:$0xff]   ;;  %v2119_v10 = vld [vmem:[#allocation5 + $0xa0] ss:$16 sps:$4 sm:$0xff]  }
  0x3a   :  { %v2117_v9 = vld [vmem:[#allocation5 + $0x2a4] ss:$16 sps:$4 sm:$0xff]   ;;  %v2120_v11 = vld [vmem:[#allocation5 + $0x2a0] ss:$16 sps:$4 sm:$0xff]  }
  0x3b   :  { %1287 = vmatpush1.bf16.msra.mxu0 %v2113_v6  ;;  %v2121_v12 = vld [vmem:[#allocation5 + $0x84] ss:$16 sps:$4 sm:$0xff]   ;;  %v2125_v14 = vld [vmem:[#allocation5 + $0x80] ss:$16 sps:$4 sm:$0xff]  }
  0x3c   :  { %1330 = vmatpush1.bf16.msra.mxu1 %v2114_v7  ;;  %1288 = vmatprep.subr.bf16.mxu0 %v2115_v8  ;;  %v2123_v13 = vld [vmem:[#allocation5 + $0x284] ss:$16 sps:$4 sm:$0xff]   ;;  %v2126_v15 = vld [vmem:[#allocation5 + $0x280] ss:$16 sps:$4 sm:$0xff]   ;;  %v2208_v7 = vld [vmem:[#allocation5 + $0xe8] ss:$16 sps:$4 sm:$0xff]  }
  0x3d   :  { %1331 = vmatprep.subr.bf16.mxu1 %v2117_v9  ;;  %v2127_v16 = vld [vmem:[#allocation5 + $0x64] ss:$16 sps:$4 sm:$0xff]   ;;  %v2131_v18 = vld [vmem:[#allocation5 + $0x60] ss:$16 sps:$4 sm:$0xff]   ;;  %v2216_v9 = vld [vmem:[#allocation5 + $0xcc] ss:$16 sps:$4 sm:$0xff]  }
  0x3e   :  { %v2129_v17 = vld [vmem:[#allocation5 + $0x264] ss:$16 sps:$4 sm:$0xff]   ;;  %v2132_v19 = vld [vmem:[#allocation5 + $0x260] ss:$16 sps:$4 sm:$0xff]  }
  0x3f   :  { %1289 = vmatpush1.bf16.msra.mxu0 %v2119_v10  ;;  %v2133_v20 = vld [vmem:[#allocation5 + $0x44] ss:$16 sps:$4 sm:$0xff]   ;;  %v2137_v22 = vld [vmem:[#allocation5 + $0x40] ss:$16 sps:$4 sm:$0xff]  }
  0x40   :  { %1332 = vmatpush1.bf16.msra.mxu1 %v2120_v11  ;;  %1290 = vmatprep.subr.bf16.mxu0 %v2121_v12  ;;  %v2135_v21 = vld [vmem:[#allocation5 + $0x244] ss:$16 sps:$4 sm:$0xff]   ;;  %v2138_v23 = vld [vmem:[#allocation5 + $0x240] ss:$16 sps:$4 sm:$0xff]   ;;  %v2214_v11 = vld [vmem:[#allocation5 + $0xc8] ss:$16 sps:$4 sm:$0xff]  }
  0x41   :  { %1333 = vmatprep.subr.bf16.mxu1 %v2123_v13  ;;  %v2139_v24 = vld [vmem:[#allocation5 + $0x24] ss:$16 sps:$4 sm:$0xff]   ;;  %v2143_v26 = vld [vmem:[#allocation5 + $0x20] ss:$16 sps:$4 sm:$0xff]   ;;  %v2222_v13 = vld [vmem:[#allocation5 + $0xac] ss:$16 sps:$4 sm:$0xff]  }
  0x42   :  { %v2141_v25 = vld [vmem:[#allocation5 + $0x224] ss:$16 sps:$4 sm:$0xff]   ;;  %v2144_v27 = vld [vmem:[#allocation5 + $0x220] ss:$16 sps:$4 sm:$0xff]  }
  0x43   :  { %1291 = vmatpush1.bf16.msra.mxu0 %v2125_v14  ;;  %v2145_v28 = vld [vmem:[#allocation5 + $0x4] ss:$16 sps:$4 sm:$0xff]   ;;  %v2149_v30 = vld [vmem:[#allocation5] ss:$16 sps:$4 sm:$0xff]  }
  0x44   :  { %1334 = vmatpush1.bf16.msra.mxu1 %v2126_v15  ;;  %1292 = vmatprep.subr.bf16.mxu0 %v2127_v16  ;;  %v2147_v29 = vld [vmem:[#allocation5 + $0x204] ss:$16 sps:$4 sm:$0xff]   ;;  %v2150_v31 = vld [vmem:[#allocation5 + $0x200] ss:$16 sps:$4 sm:$0xff]   ;;  %v2220_v15 = vld [vmem:[#allocation5 + $0xa8] ss:$16 sps:$4 sm:$0xff]  }
  0x45   :  { %1335 = vmatprep.subr.bf16.mxu1 %v2129_v17  ;;  %v2151_v32 = vld [vmem:[#allocation5 + $0x1e4] ss:$16 sps:$4 sm:$0xff]   ;;  %v2155_v34 = vld [vmem:[#allocation5 + $0x1e0] ss:$16 sps:$4 sm:$0xff]   ;;  %v2228_v17 = vld [vmem:[#allocation5 + $0x8c] ss:$16 sps:$4 sm:$0xff]  }
  0x46   :  { %v2153_v33 = vld [vmem:[#allocation5 + $0x3e4] ss:$16 sps:$4 sm:$0xff]   ;;  %v2156_v35 = vld [vmem:[#allocation5 + $0x3e0] ss:$16 sps:$4 sm:$0xff]  }
  0x47   :  { %1293 = vmatpush1.bf16.msra.mxu0 %v2131_v18  ;;  %v2157_v36 = vld [vmem:[#allocation5 + $0x1c4] ss:$16 sps:$4 sm:$0xff]   ;;  %v2161_v38 = vld [vmem:[#allocation5 + $0x1c0] ss:$16 sps:$4 sm:$0xff]  }
  0x48   :  { %1336 = vmatpush1.bf16.msra.mxu1 %v2132_v19  ;;  %1294 = vmatprep.subr.bf16.mxu0 %v2133_v20  ;;  %v2159_v37 = vld [vmem:[#allocation5 + $0x3c4] ss:$16 sps:$4 sm:$0xff]   ;;  %v2162_v39 = vld [vmem:[#allocation5 + $0x3c0] ss:$16 sps:$4 sm:$0xff]   ;;  %v2226_v19 = vld [vmem:[#allocation5 + $0x88] ss:$16 sps:$4 sm:$0xff]  }
  0x49   :  { %1337 = vmatprep.subr.bf16.mxu1 %v2135_v21  ;;  %v2163_v40 = vld [vmem:[#allocation5 + $0x1a4] ss:$16 sps:$4 sm:$0xff]   ;;  %v2167_v42 = vld [vmem:[#allocation5 + $0x1a0] ss:$16 sps:$4 sm:$0xff]   ;;  %v2234_v21 = vld [vmem:[#allocation5 + $0x6c] ss:$16 sps:$4 sm:$0xff]  }
  0x4a   :  { %v2165_v41 = vld [vmem:[#allocation5 + $0x3a4] ss:$16 sps:$4 sm:$0xff]   ;;  %v2168_v43 = vld [vmem:[#allocation5 + $0x3a0] ss:$16 sps:$4 sm:$0xff]  }
  0x4b   :  { %1295 = vmatpush1.bf16.msra.mxu0 %v2137_v22  ;;  %v2169_v44 = vld [vmem:[#allocation5 + $0x184] ss:$16 sps:$4 sm:$0xff]   ;;  %v2173_v46 = vld [vmem:[#allocation5 + $0x180] ss:$16 sps:$4 sm:$0xff]  }
  0x4c   :  { %1338 = vmatpush1.bf16.msra.mxu1 %v2138_v23  ;;  %1296 = vmatprep.subr.bf16.mxu0 %v2139_v24  ;;  %v2171_v45 = vld [vmem:[#allocation5 + $0x384] ss:$16 sps:$4 sm:$0xff]   ;;  %v2174_v47 = vld [vmem:[#allocation5 + $0x380] ss:$16 sps:$4 sm:$0xff]   ;;  %v2232_v23 = vld [vmem:[#allocation5 + $0x68] ss:$16 sps:$4 sm:$0xff]  }
  0x4d   :  { %1339 = vmatprep.subr.bf16.mxu1 %v2141_v25  ;;  %v2175_v48 = vld [vmem:[#allocation5 + $0x164] ss:$16 sps:$4 sm:$0xff]   ;;  %v2179_v52 = vld [vmem:[#allocation5 + $0x160] ss:$16 sps:$4 sm:$0xff]   ;;  %v2240_v25 = vld [vmem:[#allocation5 + $0x4c] ss:$16 sps:$4 sm:$0xff]  }
  0x4e   :  { %v2201_v49 = vld [vmem:[#allocation2 + $0x4] ss:$24 sps:$4 sm:$0xff]   ;;  %v2180_v53 = vld [vmem:[#allocation5 + $0x360] ss:$16 sps:$4 sm:$0xff]  }
  0x4f   :  { %1297 = vmatpush1.bf16.msra.mxu0 %v2143_v26  ;;  %v2177_v50 = vld [vmem:[#allocation5 + $0x364] ss:$16 sps:$4 sm:$0xff]   ;;  %1316 = vmatprep.mubr.bf16.mxu0 %v2201_v49  ;;  %v2185_v56 = vld [vmem:[#allocation5 + $0x140] ss:$16 sps:$4 sm:$0xff]  }
  0x50   :  { %1340 = vmatpush1.bf16.msra.mxu1 %v2144_v27  ;;  %1298 = vmatprep.subr.bf16.mxu0 %v2145_v28  ;;  %v2572_v51 = vld [vmem:[#allocation2 + $0xc] ss:$24 sps:$4 sm:$0xff]   ;;  %v2186_v57 = vld [vmem:[#allocation5 + $0x340] ss:$16 sps:$4 sm:$0xff]   ;;  %v2238_v27 = vld [vmem:[#allocation5 + $0x48] ss:$16 sps:$4 sm:$0xff]  }
  0x51   :  { %1341 = vmatprep.subr.bf16.mxu1 %v2147_v29  ;;  %1359 = vmatprep.mubr.bf16.mxu1 %v2572_v51  ;;  %v2181_v54 = vld [vmem:[#allocation5 + $0x144] ss:$16 sps:$4 sm:$0xff]   ;;  %v2191_v60 = vld [vmem:[#allocation5 + $0x120] ss:$16 sps:$4 sm:$0xff]   ;;  %v2246_v29 = vld [vmem:[#allocation5 + $0x2c] ss:$16 sps:$4 sm:$0xff]  }
  0x52   :  { %v2183_v55 = vld [vmem:[#allocation5 + $0x344] ss:$16 sps:$4 sm:$0xff]   ;;  %v2192_v61 = vld [vmem:[#allocation5 + $0x320] ss:$16 sps:$4 sm:$0xff]  }
  0x53   :  { %1299 = vmatpush1.bf16.msra.mxu0 %v2149_v30  ;;  %v2187_v58 = vld [vmem:[#allocation5 + $0x124] ss:$16 sps:$4 sm:$0xff]   ;;  %v2197_v0 = vld [vmem:[#allocation5 + $0x100] ss:$16 sps:$4 sm:$0xff]  }
  0x54   :  { %1342 = vmatpush1.bf16.msra.mxu1 %v2150_v31  ;;  %1300 = vmatprep.subr.bf16.mxu0 %v2151_v32  ;;  %v2189_v59 = vld [vmem:[#allocation5 + $0x324] ss:$16 sps:$4 sm:$0xff]   ;;  %v2198_v1 = vld [vmem:[#allocation5 + $0x300] ss:$16 sps:$4 sm:$0xff]   ;;  %v2244_v31 = vld [vmem:[#allocation5 + $0x28] ss:$16 sps:$4 sm:$0xff]  }
  0x55   :  { %1343 = vmatprep.subr.bf16.mxu1 %v2153_v33  ;;  %v2193_v62 = vld [vmem:[#allocation5 + $0x104] ss:$16 sps:$4 sm:$0xff]   ;;  %v2575_v4 = vld [vmem:[#allocation2] ss:$24 sps:$4 sm:$0xff]   ;;  %v2252_v33 = vld [vmem:[#allocation5 + $0xc] ss:$16 sps:$4 sm:$0xff]  }
  0x56   :  { %v2195_v63 = vld [vmem:[#allocation5 + $0x304] ss:$16 sps:$4 sm:$0xff]   ;;  %v2577_v5 = vld [vmem:[#allocation2 + $0x8] ss:$24 sps:$4 sm:$0xff]  }
  0x57   :  { %1301 = vmatpush2.bf16.msra.mxu0 %v2155_v34  ;;  %v2207_v2 = vld [vmem:[#allocation5 + $0x4e4] ss:$16 sps:$4 sm:$0xff]   ;;  %v2205_v6 = vld [vmem:[#allocation5 + $0x4e0] ss:$16 sps:$4 sm:$0xff]  }
  0x58   :  { %1344 = vmatpush2.bf16.msra.mxu1 %v2156_v35  ;;  %1302 = vmatprep.subr.bf16.mxu0 %v2157_v36  ;;  %v2213_v8 = vld [vmem:[#allocation5 + $0x4c4] ss:$16 sps:$4 sm:$0xff]   ;;  %v2211_v10 = vld [vmem:[#allocation5 + $0x4c0] ss:$16 sps:$4 sm:$0xff]   ;;  %v2250_v36 = vld [vmem:[#allocation5 + $0x8] ss:$16 sps:$4 sm:$0xff]  }
  0x59   :  { %1345 = vmatprep.subr.bf16.mxu1 %v2159_v37  ;;  %v2219_v12 = vld [vmem:[#allocation5 + $0x4a4] ss:$16 sps:$4 sm:$0xff]   ;;  %v2217_v14 = vld [vmem:[#allocation5 + $0x4a0] ss:$16 sps:$4 sm:$0xff]  }
  0x5a   :  { %v2225_v16 = vld [vmem:[#allocation5 + $0x484] ss:$16 sps:$4 sm:$0xff]   ;;  %v2223_v18 = vld [vmem:[#allocation5 + $0x480] ss:$16 sps:$4 sm:$0xff]  }
  0x5b   :  { %1303 = vmatpush2.bf16.msra.mxu0 %v2161_v38  ;;  %v2231_v20 = vld [vmem:[#allocation5 + $0x464] ss:$16 sps:$4 sm:$0xff]   ;;  %v2229_v22 = vld [vmem:[#allocation5 + $0x460] ss:$16 sps:$4 sm:$0xff]   ;;  %v2258_v38 = vld [vmem:[#allocation5 + $0x1ec] ss:$16 sps:$4 sm:$0xff]  }
  0x5c   :  { %1346 = vmatpush2.bf16.msra.mxu1 %v2162_v39  ;;  %1304 = vmatprep.subr.bf16.mxu0 %v2163_v40  ;;  %v2237_v24 = vld [vmem:[#allocation5 + $0x444] ss:$16 sps:$4 sm:$0xff]   ;;  %v2235_v26 = vld [vmem:[#allocation5 + $0x440] ss:$16 sps:$4 sm:$0xff]   ;;  %v2256_v40 = vld [vmem:[#allocation5 + $0x1e8] ss:$16 sps:$4 sm:$0xff]  }
  0x5d   :  { %1347 = vmatprep.subr.bf16.mxu1 %v2165_v41  ;;  %v2243_v28 = vld [vmem:[#allocation5 + $0x424] ss:$16 sps:$4 sm:$0xff]   ;;  %v2241_v30 = vld [vmem:[#allocation5 + $0x420] ss:$16 sps:$4 sm:$0xff]  }
  0x5e   :  { %v2249_v32 = vld [vmem:[#allocation5 + $0x404] ss:$16 sps:$4 sm:$0xff]   ;;  %v2247_v35 = vld [vmem:[#allocation5 + $0x400] ss:$16 sps:$4 sm:$0xff]  }
  0x5f   :  { %1305 = vmatpush2.bf16.msra.mxu0 %v2167_v42  ;;  %v2581_v34 = vld [vmem:[#allocation2 + $0x14] ss:$24 sps:$4 sm:$0xff]   ;;  %v2253_v39 = vld [vmem:[#allocation5 + $0x5e0] ss:$16 sps:$4 sm:$0xff]  }
  0x60   :  { %1348 = vmatpush2.bf16.msra.mxu1 %v2168_v43  ;;  %1306 = vmatprep.subr.bf16.mxu0 %v2169_v44  ;;  %v2255_v37 = vld [vmem:[#allocation5 + $0x5e4] ss:$16 sps:$4 sm:$0xff]   ;;  %v2264_v42 = vld [vmem:[#allocation5 + $0x1cc] ss:$16 sps:$4 sm:$0xff]   ;;  %v2259_v43 = vld [vmem:[#allocation5 + $0x5c0] ss:$16 sps:$4 sm:$0xff]  }
  0x61   :  { %1349 = vmatprep.subr.bf16.mxu1 %v2171_v45  ;;  %v2261_v41 = vld [vmem:[#allocation5 + $0x5c4] ss:$16 sps:$4 sm:$0xff]   ;;  %v2262_v44 = vld [vmem:[#allocation5 + $0x1c8] ss:$16 sps:$4 sm:$0xff]  }
  0x62   :  { %v2267_v45 = vld [vmem:[#allocation5 + $0x5a4] ss:$16 sps:$4 sm:$0xff]  }
  0x63   :  { %1307 = vmatpush2.bf16.msra.mxu0 %v2173_v46  ;;  %v2270_v46 = vld [vmem:[#allocation5 + $0x1ac] ss:$16 sps:$4 sm:$0xff]  }
  0x64   :  { %1350 = vmatpush2.bf16.msra.mxu1 %v2174_v47  ;;  %1308 = vmatprep.subr.bf16.mxu0 %v2175_v48  ;;  %v2265_v47 = vld [vmem:[#allocation5 + $0x5a0] ss:$16 sps:$4 sm:$0xff]   ;;  %v2268_v48 = vld [vmem:[#allocation5 + $0x1a8] ss:$16 sps:$4 sm:$0xff]  }
  0x65   :  { %1351 = vmatprep.subr.bf16.mxu1 %v2177_v50  ;;  %v2276_v50 = vld [vmem:[#allocation5 + $0x18c] ss:$16 sps:$4 sm:$0xff]  }
  0x67   :  { %1309 = vmatpush2.bf16.msra.mxu0 %v2179_v52  ;;  %v2271_v52 = vld [vmem:[#allocation5 + $0x580] ss:$16 sps:$4 sm:$0xff]  }
  0x68   :  { %1352 = vmatpush2.bf16.msra.mxu1 %v2180_v53  ;;  %1310 = vmatprep.subr.bf16.mxu0 %v2181_v54  ;;  %v2274_v53 = vld [vmem:[#allocation5 + $0x188] ss:$16 sps:$4 sm:$0xff]   ;;  %v2279_v54 = vld [vmem:[#allocation5 + $0x564] ss:$16 sps:$4 sm:$0xff]  }
  0x69   :  { %1353 = vmatprep.subr.bf16.mxu1 %v2183_v55  ;;  %v2282_v55 = vld [vmem:[#allocation5 + $0x16c] ss:$16 sps:$4 sm:$0xff]  }
  0x6b   :  { %1311 = vmatpush2.bf16.msra.mxu0 %v2185_v56  ;;  %v2277_v56 = vld [vmem:[#allocation5 + $0x560] ss:$16 sps:$4 sm:$0xff]  }
  0x6c   :  { %1354 = vmatpush2.bf16.msra.mxu1 %v2186_v57  ;;  %1312 = vmatprep.subr.bf16.mxu0 %v2187_v58  ;;  %v2280_v57 = vld [vmem:[#allocation5 + $0x168] ss:$16 sps:$4 sm:$0xff]   ;;  %v2285_v58 = vld [vmem:[#allocation5 + $0x544] ss:$16 sps:$4 sm:$0xff]  }
  0x6d   :  { %1355 = vmatprep.subr.bf16.mxu1 %v2189_v59  ;;  %v2288_v59 = vld [vmem:[#allocation5 + $0x14c] ss:$16 sps:$4 sm:$0xff]  }
  0x6f   :  { %1313 = vmatpush2.bf16.msra.mxu0 %v2191_v60  ;;  %v2283_v60 = vld [vmem:[#allocation5 + $0x540] ss:$16 sps:$4 sm:$0xff]  }
  0x70   :  { %1356 = vmatpush2.bf16.msra.mxu1 %v2192_v61  ;;  %1314 = vmatprep.subr.bf16.mxu0 %v2193_v62  ;;  %v2286_v61 = vld [vmem:[#allocation5 + $0x148] ss:$16 sps:$4 sm:$0xff]   ;;  %v2291_v62 = vld [vmem:[#allocation5 + $0x524] ss:$16 sps:$4 sm:$0xff]  }
  0x71   :  { %1357 = vmatprep.subr.bf16.mxu1 %v2195_v63  ;;  %v2294_v63 = vld [vmem:[#allocation5 + $0x12c] ss:$16 sps:$4 sm:$0xff]  }
  0x73   :  { %1315 = vmatpush2.bf16.msra.mxu0 %v2197_v0  ;;  %v2289_v0 = vld [vmem:[#allocation5 + $0x520] ss:$16 sps:$4 sm:$0xff]  }
  0x74   :  { %1358 = vmatpush2.bf16.msra.mxu1 %v2198_v1  ;;  %1370 = vmatprep.subr.bf16.mxu0 %v2207_v2  ;;  %v2292_v1 = vld [vmem:[#allocation5 + $0x128] ss:$16 sps:$4 sm:$0xff]   ;;  %v2297_v2 = vld [vmem:[#allocation5 + $0x504] ss:$16 sps:$4 sm:$0xff]  }
  0x75   :  { %1413 = vmatprep.subr.bf16.mxu1 %v2210_v3  ;;  %v2300_v3 = vld [vmem:[#allocation5 + $0x10c] ss:$16 sps:$4 sm:$0xff]  }
  0x76   :  { %1317 = vmatmul.mubr.bf16.vlgmr.msra.gmra.mxu0 %v2575_v4 }
  0x77   :  { %1360 = vmatmul.mubr.bf16.vlgmr.msra.gmra.mxu1 %v2577_v5  ;;  %1371 = vmatpush1.bf16.msra.mxu0 %v2205_v6  ;;  %v2295_v6 = vld [vmem:[#allocation5 + $0x500] ss:$16 sps:$4 sm:$0xff]  }
  0x78   :  { %1414 = vmatpush1.bf16.msra.mxu1 %v2208_v7  ;;  %1372 = vmatprep.subr.bf16.mxu0 %v2213_v8  ;;  %v2298_v7 = vld [vmem:[#allocation5 + $0x108] ss:$16 sps:$4 sm:$0xff]   ;;  %v2306_v8 = vld [vmem:[#allocation5 + $0x2ec] ss:$16 sps:$4 sm:$0xff]  }
  0x79   :  { %1415 = vmatprep.subr.bf16.mxu1 %v2216_v9  ;;  %1445 = vmatprep.mubr.bf16.mxu1 %v2201_v49  ;;  %v2273_v49 = vld [vmem:[#allocation5 + $0x584] ss:$16 sps:$4 sm:$0xff]   ;;  %v2309_v9 = vld [vmem:[#allocation5 + $0x4ec] ss:$16 sps:$4 sm:$0xff]  }
  0x7a   :  { %1402 = vmatprep.mubr.bf16.mxu0 %v2581_v34 }
  0x7b   :  { %1373 = vmatpush1.bf16.msra.mxu0 %v2211_v10  ;;  %v2584_v10 = vld [vmem:[#allocation2 + $0x10] ss:$24 sps:$4 sm:$0xff]  }
  0x7c   :  { %1416 = vmatpush1.bf16.msra.mxu1 %v2214_v11  ;;  %1374 = vmatprep.subr.bf16.mxu0 %v2219_v12  ;;  %v2304_v11 = vld [vmem:[#allocation5 + $0x2e8] ss:$16 sps:$4 sm:$0xff]  }
  0x7d   :  { %1417 = vmatprep.subr.bf16.mxu1 %v2222_v13  ;;  %v2307_v12 = vld [vmem:[#allocation5 + $0x4e8] ss:$16 sps:$4 sm:$0xff]   ;;  %v2312_v13 = vld [vmem:[#allocation5 + $0x2cc] ss:$16 sps:$4 sm:$0xff]  }
  0x7f   :  { %1375 = vmatpush1.bf16.msra.mxu0 %v2217_v14  ;;  %v2315_v14 = vld [vmem:[#allocation5 + $0x4cc] ss:$16 sps:$4 sm:$0xff]  }
  0x80   :  { %1418 = vmatpush1.bf16.msra.mxu1 %v2220_v15  ;;  %1376 = vmatprep.subr.bf16.mxu0 %v2225_v16  ;;  %v2310_v15 = vld [vmem:[#allocation5 + $0x2c8] ss:$16 sps:$4 sm:$0xff]  }
  0x81   :  { %1419 = vmatprep.subr.bf16.mxu1 %v2228_v17  ;;  %v2313_v16 = vld [vmem:[#allocation5 + $0x4c8] ss:$16 sps:$4 sm:$0xff]   ;;  %v2318_v17 = vld [vmem:[#allocation5 + $0x2ac] ss:$16 sps:$4 sm:$0xff]  }
  0x83   :  { %1377 = vmatpush1.bf16.msra.mxu0 %v2223_v18  ;;  %v2321_v18 = vld [vmem:[#allocation5 + $0x4ac] ss:$16 sps:$4 sm:$0xff]  }
  0x84   :  { %1420 = vmatpush1.bf16.msra.mxu1 %v2226_v19  ;;  %1378 = vmatprep.subr.bf16.mxu0 %v2231_v20  ;;  %v2316_v19 = vld [vmem:[#allocation5 + $0x2a8] ss:$16 sps:$4 sm:$0xff]  }
  0x85   :  { %1421 = vmatprep.subr.bf16.mxu1 %v2234_v21  ;;  %v2319_v20 = vld [vmem:[#allocation5 + $0x4a8] ss:$16 sps:$4 sm:$0xff]   ;;  %v2324_v21 = vld [vmem:[#allocation5 + $0x28c] ss:$16 sps:$4 sm:$0xff]  }
  0x87   :  { %1379 = vmatpush1.bf16.msra.mxu0 %v2229_v22  ;;  %v2322_v22 = vld [vmem:[#allocation5 + $0x288] ss:$16 sps:$4 sm:$0xff]  }
  0x88   :  { %1422 = vmatpush1.bf16.msra.mxu1 %v2232_v23  ;;  %1380 = vmatprep.subr.bf16.mxu0 %v2237_v24  ;;  %v2325_v23 = vld [vmem:[#allocation5 + $0x488] ss:$16 sps:$4 sm:$0xff]   ;;  %v2330_v24 = vld [vmem:[#allocation5 + $0x26c] ss:$16 sps:$4 sm:$0xff]  }
  0x89   :  { %1423 = vmatprep.subr.bf16.mxu1 %v2240_v25  ;;  %v2333_v25 = vld [vmem:[#allocation5 + $0x46c] ss:$16 sps:$4 sm:$0xff]  }
  0x8b   :  { %1381 = vmatpush1.bf16.msra.mxu0 %v2235_v26  ;;  %v2331_v26 = vld [vmem:[#allocation5 + $0x468] ss:$16 sps:$4 sm:$0xff]  }
  0x8c   :  { %1424 = vmatpush1.bf16.msra.mxu1 %v2238_v27  ;;  %1382 = vmatprep.subr.bf16.mxu0 %v2243_v28  ;;  %v2336_v27 = vld [vmem:[#allocation5 + $0x24c] ss:$16 sps:$4 sm:$0xff]  }
  0x8d   :  { %1425 = vmatprep.subr.bf16.mxu1 %v2246_v29  ;;  %v2339_v28 = vld [vmem:[#allocation5 + $0x44c] ss:$16 sps:$4 sm:$0xff]   ;;  %v2334_v29 = vld [vmem:[#allocation5 + $0x248] ss:$16 sps:$4 sm:$0xff]  }
  0x8f   :  { %1383 = vmatpush1.bf16.msra.mxu0 %v2241_v30  ;;  %v2337_v30 = vld [vmem:[#allocation5 + $0x448] ss:$16 sps:$4 sm:$0xff]  }
  0x90   :  { %1426 = vmatpush1.bf16.msra.mxu1 %v2244_v31  ;;  %1384 = vmatprep.subr.bf16.mxu0 %v2249_v32  ;;  %v2342_v31 = vld [vmem:[#allocation5 + $0x22c] ss:$16 sps:$4 sm:$0xff]  }
  0x91   :  { %1427 = vmatprep.subr.bf16.mxu1 %v2252_v33  ;;  %v2345_v32 = vld [vmem:[#allocation5 + $0x42c] ss:$16 sps:$4 sm:$0xff]   ;;  %v2340_v33 = vld [vmem:[#allocation5 + $0x228] ss:$16 sps:$4 sm:$0xff]  }
  0x93   :  { %1385 = vmatpush1.bf16.msra.mxu0 %v2247_v35  ;;  %v2348_v35 = vld [vmem:[#allocation5 + $0x20c] ss:$16 sps:$4 sm:$0xff]  }
  0x94   :  { %1428 = vmatpush1.bf16.msra.mxu1 %v2250_v36  ;;  %1386 = vmatprep.subr.bf16.mxu0 %v2255_v37  ;;  %v2351_v36 = vld [vmem:[#allocation5 + $0x40c] ss:$16 sps:$4 sm:$0xff]   ;;  %v2346_v37 = vld [vmem:[#allocation5 + $0x208] ss:$16 sps:$4 sm:$0xff]  }
  0x95   :  { %1429 = vmatprep.subr.bf16.mxu1 %v2258_v38  ;;  %v2349_v38 = vld [vmem:[#allocation5 + $0x408] ss:$16 sps:$4 sm:$0xff]  }
  0x97   :  { %1387 = vmatpush2.bf16.msra.mxu0 %v2253_v39  ;;  %v2354_v39 = vld [vmem:[#allocation5 + $0x3ec] ss:$16 sps:$4 sm:$0xff]  }
  0x98   :  { %1430 = vmatpush2.bf16.msra.mxu1 %v2256_v40  ;;  %1388 = vmatprep.subr.bf16.mxu0 %v2261_v41  ;;  %v2357_v40 = vld [vmem:[#allocation5 + $0x5ec] ss:$16 sps:$4 sm:$0xff]   ;;  %v2352_v41 = vld [vmem:[#allocation5 + $0x3e8] ss:$16 sps:$4 sm:$0xff]  }
  0x99   :  { %1431 = vmatprep.subr.bf16.mxu1 %v2264_v42  ;;  %v2355_v42 = vld [vmem:[#allocation5 + $0x5e8] ss:$16 sps:$4 sm:$0xff]  }
  0x9b   :  { %1389 = vmatpush2.bf16.msra.mxu0 %v2259_v43  ;;  %v2360_v43 = vld [vmem:[#allocation5 + $0x3cc] ss:$16 sps:$4 sm:$0xff]  }
  0x9c   :  { %1432 = vmatpush2.bf16.msra.mxu1 %v2262_v44  ;;  %1390 = vmatprep.subr.bf16.mxu0 %v2267_v45  ;;  %v2363_v44 = vld [vmem:[#allocation5 + $0x5cc] ss:$16 sps:$4 sm:$0xff]   ;;  %v2358_v45 = vld [vmem:[#allocation5 + $0x3c8] ss:$16 sps:$4 sm:$0xff]  }
  0x9d   :  { %1433 = vmatprep.subr.bf16.mxu1 %v2270_v46  ;;  %v2361_v46 = vld [vmem:[#allocation5 + $0x5c8] ss:$16 sps:$4 sm:$0xff]  }
  0x9f   :  { %1391 = vmatpush2.bf16.msra.mxu0 %v2265_v47  ;;  %v2366_v47 = vld [vmem:[#allocation5 + $0x3ac] ss:$16 sps:$4 sm:$0xff]  }
  0xa0   :  { %1434 = vmatpush2.bf16.msra.mxu1 %v2268_v48  ;;  %1392 = vmatprep.subr.bf16.mxu0 %v2273_v49  ;;  %v2369_v48 = vld [vmem:[#allocation5 + $0x5ac] ss:$16 sps:$4 sm:$0xff]   ;;  %v2364_v49 = vld [vmem:[#allocation5 + $0x3a8] ss:$16 sps:$4 sm:$0xff]  }
  0xa1   :  { %1435 = vmatprep.subr.bf16.mxu1 %v2276_v50  ;;  %v2367_v50 = vld [vmem:[#allocation5 + $0x5a8] ss:$16 sps:$4 sm:$0xff]  }
  0xa3   :  { %1393 = vmatpush2.bf16.msra.mxu0 %v2271_v52  ;;  %v2372_v52 = vld [vmem:[#allocation5 + $0x38c] ss:$16 sps:$4 sm:$0xff]  }
  0xa4   :  { %1436 = vmatpush2.bf16.msra.mxu1 %v2274_v53  ;;  %1394 = vmatprep.subr.bf16.mxu0 %v2279_v54  ;;  %v2375_v53 = vld [vmem:[#allocation5 + $0x58c] ss:$16 sps:$4 sm:$0xff]   ;;  %v2370_v54 = vld [vmem:[#allocation5 + $0x388] ss:$16 sps:$4 sm:$0xff]  }
  0xa5   :  { %1437 = vmatprep.subr.bf16.mxu1 %v2282_v55  ;;  %v2373_v55 = vld [vmem:[#allocation5 + $0x588] ss:$16 sps:$4 sm:$0xff]  }
  0xa7   :  { %1395 = vmatpush2.bf16.msra.mxu0 %v2277_v56  ;;  %v2378_v56 = vld [vmem:[#allocation5 + $0x36c] ss:$16 sps:$4 sm:$0xff]  }
  0xa8   :  { %1438 = vmatpush2.bf16.msra.mxu1 %v2280_v57  ;;  %1396 = vmatprep.subr.bf16.mxu0 %v2285_v58  ;;  %v2381_v57 = vld [vmem:[#allocation5 + $0x56c] ss:$16 sps:$4 sm:$0xff]   ;;  %v2376_v58 = vld [vmem:[#allocation5 + $0x368] ss:$16 sps:$4 sm:$0xff]  }
  0xa9   :  { %1439 = vmatprep.subr.bf16.mxu1 %v2288_v59  ;;  %v2379_v59 = vld [vmem:[#allocation5 + $0x568] ss:$16 sps:$4 sm:$0xff]  }
  0xab   :  { %1397 = vmatpush2.bf16.msra.mxu0 %v2283_v60  ;;  %v2384_v60 = vld [vmem:[#allocation5 + $0x34c] ss:$16 sps:$4 sm:$0xff]  }
  0xac   :  { %1440 = vmatpush2.bf16.msra.mxu1 %v2286_v61  ;;  %1398 = vmatprep.subr.bf16.mxu0 %v2291_v62  ;;  %v2387_v61 = vld [vmem:[#allocation5 + $0x54c] ss:$16 sps:$4 sm:$0xff]   ;;  %v2382_v62 = vld [vmem:[#allocation5 + $0x348] ss:$16 sps:$4 sm:$0xff]  }
  0xad   :  { %1441 = vmatprep.subr.bf16.mxu1 %v2294_v63  ;;  %v2385_v63 = vld [vmem:[#allocation5 + $0x548] ss:$16 sps:$4 sm:$0xff]  }
  0xaf   :  { %1399 = vmatpush2.bf16.msra.mxu0 %v2289_v0  ;;  %v2390_v0 = vld [vmem:[#allocation5 + $0x32c] ss:$16 sps:$4 sm:$0xff]  }
  0xb0   :  { %1442 = vmatpush2.bf16.msra.mxu1 %v2292_v1  ;;  %1400 = vmatprep.subr.bf16.mxu0 %v2297_v2  ;;  %v2393_v1 = vld [vmem:[#allocation5 + $0x52c] ss:$16 sps:$4 sm:$0xff]   ;;  %v2388_v2 = vld [vmem:[#allocation5 + $0x328] ss:$16 sps:$4 sm:$0xff]  }
  0xb1   :  { %1443 = vmatprep.subr.bf16.mxu1 %v2300_v3  ;;  %v2391_v3 = vld [vmem:[#allocation5 + $0x528] ss:$16 sps:$4 sm:$0xff]  }
  0xb3   :  { %1401 = vmatpush2.bf16.msra.mxu0 %v2295_v6  ;;  %v2396_v6 = vld [vmem:[#allocation5 + $0x30c] ss:$16 sps:$4 sm:$0xff]  }
  0xb4   :  { %1444 = vmatpush2.bf16.msra.mxu1 %v2298_v7  ;;  %1456 = vmatprep.subr.bf16.mxu0 %v2306_v8  ;;  %v2399_v7 = vld [vmem:[#allocation5 + $0x50c] ss:$16 sps:$4 sm:$0xff]   ;;  %v2394_v8 = vld [vmem:[#allocation5 + $0x308] ss:$16 sps:$4 sm:$0xff]  }
  0xb5   :  { %1499 = vmatprep.subr.bf16.mxu1 %v2309_v9  ;;  %v2397_v9 = vld [vmem:[#allocation5 + $0x508] ss:$16 sps:$4 sm:$0xff]  }
  0xb6   :  { %1403 = vmatmul.mubr.bf16.vlgmr.msra.gmra.mxu0 %v2584_v10 }
  0xb7   :  { %1446 = vmatmul.mubr.bf16.vlgmr.msra.gmra.mxu1 %v2575_v4  ;;  %1457 = vmatpush1.bf16.msra.mxu0 %v2304_v11  ;;  %v2327_v4 = vld [vmem:[#allocation5 + $0x48c] ss:$16 sps:$4 sm:$0xff]  }
  0xb8   :  { %1500 = vmatpush1.bf16.msra.mxu1 %v2307_v12  ;;  %1458 = vmatprep.subr.bf16.mxu0 %v2312_v13  ;;  %v1581_v11 = vld [vmem:[#allocation8 + $0xf8] sm:$0xff]  ;;  %v1580_v13 = vld [vmem:[#allocation8 + $0xf0] sm:$0xff] }
  0xb9   :  { %1501 = vmatprep.subr.bf16.mxu1 %v2315_v14  ;;  %1488 = vmatprep.mubr.bf16.mxu0 %v2572_v51  ;;  %v2328_v51 = vld [vmem:[#allocation5 + $0x268] ss:$16 sps:$4 sm:$0xff]   ;;  %v1565_v12 = vld [vmem:[#allocation8 + $0x78] sm:$0xff] }
  0xba   :  { %1531 = vmatprep.mubr.bf16.mxu1 %v2581_v34  ;;  %v2343_v34 = vld [vmem:[#allocation5 + $0x428] ss:$16 sps:$4 sm:$0xff]  }
  0xbb   :  { %1459 = vmatpush1.bf16.msra.mxu0 %v2310_v15  ;;  %v1564_v14 = vld [vmem:[#allocation8 + $0x70] sm:$0xff]  ;;  %v1579_v15 = vld [vmem:[#allocation8 + $0xe8] sm:$0xff] }
  0xbc   :  { %1502 = vmatpush1.bf16.msra.mxu1 %v2313_v16  ;;  %1460 = vmatprep.subr.bf16.mxu0 %v2318_v17  ;;  %v1563_v16 = vld [vmem:[#allocation8 + $0x68] sm:$0xff]  ;;  %v1578_v17 = vld [vmem:[#allocation8 + $0xe0] sm:$0xff] }
  0xbd   :  { %1503 = vmatprep.subr.bf16.mxu1 %v2321_v18  ;;  %v1562_v18 = vld [vmem:[#allocation8 + $0x60] sm:$0xff] }
  0xbf   :  { %1461 = vmatpush1.bf16.msra.mxu0 %v2316_v19  ;;  %v1577_v19 = vld [vmem:[#allocation8 + $0xd8] sm:$0xff] }
  0xc0   :  { %1504 = vmatpush1.bf16.msra.mxu1 %v2319_v20  ;;  %1462 = vmatprep.subr.bf16.mxu0 %v2324_v21  ;;  %v1561_v20 = vld [vmem:[#allocation8 + $0x58] sm:$0xff]  ;;  %v1576_v21 = vld [vmem:[#allocation8 + $0xd0] sm:$0xff] }
  0xc1   :  { %1505 = vmatprep.subr.bf16.mxu1 %v2327_v4  ;;  %v1560_v4 = vld [vmem:[#allocation8 + $0x50] sm:$0xff] }
  0xc3   :  { %1463 = vmatpush1.bf16.msra.mxu0 %v2322_v22  ;;  %v1574_v22 = vld [vmem:[#allocation8 + $0xc0] sm:$0xff] }
  0xc4   :  { %1506 = vmatpush1.bf16.msra.mxu1 %v2325_v23  ;;  %1464 = vmatprep.subr.bf16.mxu0 %v2330_v24  ;;  %v1558_v23 = vld [vmem:[#allocation8 + $0x40] sm:$0xff]  ;;  %v1613_v24 = vld [vmem:[#allocation8 + $0x1f8] sm:$0xff] }
  0xc5   :  { %1507 = vmatprep.subr.bf16.mxu1 %v2333_v25  ;;  %v1597_v25 = vld [vmem:[#allocation8 + $0x178] sm:$0xff] }
  0xc7   :  { %1465 = vmatpush1.bf16.msra.mxu0 %v2328_v51  ;;  %v1612_v51 = vld [vmem:[#allocation8 + $0x1f0] sm:$0xff] }
  0xc8   :  { %1508 = vmatpush1.bf16.msra.mxu1 %v2331_v26  ;;  %1466 = vmatprep.subr.bf16.mxu0 %v2336_v27  ;;  %v1573_v26 = vld [vmem:[#allocation8 + $0xb8] sm:$0xff]  ;;  %v1596_v27 = vld [vmem:[#allocation8 + $0x170] sm:$0xff] }
  0xc9   :  { %1509 = vmatprep.subr.bf16.mxu1 %v2339_v28  ;;  %v1557_v28 = vld [vmem:[#allocation8 + $0x38] sm:$0xff] }
  0xcb   :  { %1467 = vmatpush1.bf16.msra.mxu0 %v2334_v29  ;;  %v1611_v29 = vld [vmem:[#allocation8 + $0x1e8] sm:$0xff] }
  0xcc   :  { %1510 = vmatpush1.bf16.msra.mxu1 %v2337_v30  ;;  %1468 = vmatprep.subr.bf16.mxu0 %v2342_v31  ;;  %v1572_v30 = vld [vmem:[#allocation8 + $0xb0] sm:$0xff]  ;;  %v1595_v31 = vld [vmem:[#allocation8 + $0x168] sm:$0xff] }
  0xcd   :  { %1511 = vmatprep.subr.bf16.mxu1 %v2345_v32  ;;  %v1556_v32 = vld [vmem:[#allocation8 + $0x30] sm:$0xff] }
  0xcf   :  { %1469 = vmatpush1.bf16.msra.mxu0 %v2340_v33  ;;  %v1610_v33 = vld [vmem:[#allocation8 + $0x1e0] sm:$0xff] }
  0xd0   :  { %1512 = vmatpush1.bf16.msra.mxu1 %v2343_v34  ;;  %1470 = vmatprep.subr.bf16.mxu0 %v2348_v35  ;;  %v1571_v34 = vld [vmem:[#allocation8 + $0xa8] sm:$0xff]  ;;  %v1594_v35 = vld [vmem:[#allocation8 + $0x160] sm:$0xff] }
  0xd1   :  { %1513 = vmatprep.subr.bf16.mxu1 %v2351_v36  ;;  %v1555_v36 = vld [vmem:[#allocation8 + $0x28] sm:$0xff] }
  0xd3   :  { %1471 = vmatpush1.bf16.msra.mxu0 %v2346_v37  ;;  %v1609_v37 = vld [vmem:[#allocation8 + $0x1d8] sm:$0xff] }
  0xd4   :  { %1514 = vmatpush1.bf16.msra.mxu1 %v2349_v38  ;;  %1472 = vmatprep.subr.bf16.mxu0 %v2354_v39  ;;  %v1570_v38 = vld [vmem:[#allocation8 + $0xa0] sm:$0xff]  ;;  %v1593_v39 = vld [vmem:[#allocation8 + $0x158] sm:$0xff] }
  0xd5   :  { %1515 = vmatprep.subr.bf16.mxu1 %v2357_v40  ;;  %v1554_v40 = vld [vmem:[#allocation8 + $0x20] sm:$0xff] }
  0xd7   :  { %1473 = vmatpush2.bf16.msra.mxu0 %v2352_v41  ;;  %v1608_v41 = vld [vmem:[#allocation8 + $0x1d0] sm:$0xff] }
  0xd8   :  { %1516 = vmatpush2.bf16.msra.mxu1 %v2355_v42  ;;  %1474 = vmatprep.subr.bf16.mxu0 %v2360_v43  ;;  %v1569_v42 = vld [vmem:[#allocation8 + $0x98] sm:$0xff]  ;;  %v1592_v43 = vld [vmem:[#allocation8 + $0x150] sm:$0xff] }
  0xd9   :  { %1517 = vmatprep.subr.bf16.mxu1 %v2363_v44  ;;  %v1553_v44 = vld [vmem:[#allocation8 + $0x18] sm:$0xff] }
  0xdb   :  { %1475 = vmatpush2.bf16.msra.mxu0 %v2358_v45  ;;  %v1607_v45 = vld [vmem:[#allocation8 + $0x1c8] sm:$0xff] }
  0xdc   :  { %1518 = vmatpush2.bf16.msra.mxu1 %v2361_v46  ;;  %1476 = vmatprep.subr.bf16.mxu0 %v2366_v47  ;;  %v1568_v46 = vld [vmem:[#allocation8 + $0x90] sm:$0xff]  ;;  %v1591_v47 = vld [vmem:[#allocation8 + $0x148] sm:$0xff] }
  0xdd   :  { %1519 = vmatprep.subr.bf16.mxu1 %v2369_v48  ;;  %v1552_v48 = vld [vmem:[#allocation8 + $0x10] sm:$0xff] }
  0xdf   :  { %1477 = vmatpush2.bf16.msra.mxu0 %v2364_v49  ;;  %v1606_v49 = vld [vmem:[#allocation8 + $0x1c0] sm:$0xff] }
  0xe0   :  { %1520 = vmatpush2.bf16.msra.mxu1 %v2367_v50  ;;  %1478 = vmatprep.subr.bf16.mxu0 %v2372_v52  ;;  %v1567_v50 = vld [vmem:[#allocation8 + $0x88] sm:$0xff]  ;;  %v1590_v52 = vld [vmem:[#allocation8 + $0x140] sm:$0xff] }
  0xe1   :  { %1521 = vmatprep.subr.bf16.mxu1 %v2375_v53  ;;  %v1551_v53 = vld [vmem:[#allocation8 + $0x8] sm:$0xff] }
  0xe3   :  { %1479 = vmatpush2.bf16.msra.mxu0 %v2370_v54  ;;  %v1605_v54 = vld [vmem:[#allocation8 + $0x1b8] sm:$0xff] }
  0xe4   :  { %1522 = vmatpush2.bf16.msra.mxu1 %v2373_v55  ;;  %1480 = vmatprep.subr.bf16.mxu0 %v2378_v56  ;;  %v1566_v55 = vld [vmem:[#allocation8 + $0x80] sm:$0xff]  ;;  %v1589_v56 = vld [vmem:[#allocation8 + $0x138] sm:$0xff] }
  0xe5   :  { %1523 = vmatprep.subr.bf16.mxu1 %v2381_v57  ;;  %v1550_v57 = vld [vmem:[#allocation8] sm:$0xff] }
  0xe7   :  { %1481 = vmatpush2.bf16.msra.mxu0 %v2376_v58  ;;  %v1604_v58 = vld [vmem:[#allocation8 + $0x1b0] sm:$0xff] }
  0xe8   :  { %1524 = vmatpush2.bf16.msra.mxu1 %v2379_v59  ;;  %1482 = vmatprep.subr.bf16.mxu0 %v2384_v60  ;;  %v1588_v59 = vld [vmem:[#allocation8 + $0x130] sm:$0xff]  ;;  %v1603_v60 = vld [vmem:[#allocation8 + $0x1a8] sm:$0xff] }
  0xe9   :  { %1525 = vmatprep.subr.bf16.mxu1 %v2387_v61  ;;  %v1587_v61 = vld [vmem:[#allocation8 + $0x128] sm:$0xff] }
  0xeb   :  { %1483 = vmatpush2.bf16.msra.mxu0 %v2382_v62  ;;  %v1602_v62 = vld [vmem:[#allocation8 + $0x1a0] sm:$0xff] }
  0xec   :  { %1526 = vmatpush2.bf16.msra.mxu1 %v2385_v63  ;;  %1484 = vmatprep.subr.bf16.mxu0 %v2390_v0  ;;  %v1586_v63 = vld [vmem:[#allocation8 + $0x120] sm:$0xff]  ;;  %v1601_v0 = vld [vmem:[#allocation8 + $0x198] sm:$0xff] }
  0xed   :  { %1527 = vmatprep.subr.bf16.mxu1 %v2393_v1  ;;  %v1585_v1 = vld [vmem:[#allocation8 + $0x118] sm:$0xff] }
  0xef   :  { %1485 = vmatpush2.bf16.msra.mxu0 %v2388_v2  ;;  %v1600_v2 = vld [vmem:[#allocation8 + $0x190] sm:$0xff] }
  0xf0   :  { %1528 = vmatpush2.bf16.msra.mxu1 %v2391_v3  ;;  %1486 = vmatprep.subr.bf16.mxu0 %v2396_v6  ;;  %v1584_v3 = vld [vmem:[#allocation8 + $0x110] sm:$0xff]  ;;  %v1599_v6 = vld [vmem:[#allocation8 + $0x188] sm:$0xff] }
  0xf1   :  { %1529 = vmatprep.subr.bf16.mxu1 %v2399_v7  ;;  %v1583_v7 = vld [vmem:[#allocation8 + $0x108] sm:$0xff] }
  0xf3   :  { %1487 = vmatpush2.bf16.msra.mxu0 %v2394_v8  ;;  %v1598_v8 = vld [vmem:[#allocation8 + $0x180] sm:$0xff] }
  0xf4   :  { %1530 = vmatpush2.bf16.msra.mxu1 %v2397_v9  ;;  %2016 = vmatprep.subr.mxu0 %v1581_v11  ;;  %v1582_v9 = vld [vmem:[#allocation8 + $0x100] sm:$0xff]  ;;  %v274_v11 = vlaneseq }
  0xf5   :  { %2054 = vmatprep.subr.mxu1 %v1613_v24 }
  0xf6   :  { %1489 = vmatmul.mubr.bf16.vlgmr.msra.gmra.mxu0 %v2577_v5  ;;  %v1575_v5 = vld [vmem:[#allocation8 + $0xc8] sm:$0xff] }
  0xf7   :  { %1532 = vmatmul.mubr.bf16.vlgmr.msra.gmra.mxu1 %v2584_v10  ;;  %2017 = vmatpush3.msra.mxu0 %v1565_v12  ;;  %v1559_v10 = vld [vmem:[#allocation8 + $0x48] sm:$0xff]  ;;  %v275_v12 = vshrl.u32 %v274_v11, 7 }
  0xf8   :  { %2018 = vmatprep.subr.mxu0 %v1580_v13  ;;  %2055 = vmatpush3.msra.mxu1 %v1597_v25 }
  0xf9   :  { %2019 = vmatpush3.msra.mxu0 %v1564_v14  ;;  %2056 = vmatprep.subr.mxu1 %v1612_v51  ;;  %v276_v14 = vsub.s32 0, %v275_v12 }
  0xfa   :  { %2020 = vmatprep.subr.mxu0 %v1579_v15  ;;  %2057 = vmatpush3.msra.mxu1 %v1596_v27  ;;  %v272_v15 = vld [vmem:[#allocation7] sm:$0xf] }
  0xfb   :  { %2021 = vmatpush3.msra.mxu0 %v1563_v16  ;;  %2058 = vmatprep.subr.mxu1 %v1611_v29  ;;  %v280_v16 = vsub.s32 1, %v275_v12 }
  0xfc   :  { %2022 = vmatprep.subr.mxu0 %v1578_v17  ;;  %2059 = vmatpush3.msra.mxu1 %v1595_v31 }
  0xfd   :  { %2023 = vmatpush3.msra.mxu0 %v1562_v18  ;;  %2060 = vmatprep.subr.mxu1 %v1610_v33  ;;  %v277_v18 = vrot.slane %v272_v15, %v276_v14 }
  0xfe   :  { %2024 = vmatprep.subr.mxu0 %v1577_v19  ;;  %2061 = vmatpush3.msra.mxu1 %v1594_v35 }
  0xff   :  { %2025 = vmatpush3.msra.mxu0 %v1561_v20  ;;  %2062 = vmatprep.subr.mxu1 %v1609_v37  ;;  %v281_v20 = vrot.slane %v272_v15, %v280_v16 }
 0x100   :  { %2026 = vmatprep.subr.mxu0 %v1576_v21  ;;  %2063 = vmatpush3.msra.mxu1 %v1593_v39 }
 0x101   :  { %2027 = vmatpush3.msra.mxu0 %v1560_v4  ;;  %2064 = vmatprep.subr.mxu1 %v1608_v41 }
 0x102   :  { %2028 = vmatprep.subr.mxu0 %v1575_v5  ;;  %2065 = vmatpush3.msra.mxu1 %v1592_v43 }
 0x103   :  { %2029 = vmatpush3.msra.mxu0 %v1559_v10  ;;  %2066 = vmatprep.subr.mxu1 %v1607_v45  ;;  %v288_v45 = vsub.s32 3, %v275_v12 }
 0x104   :  { %2030 = vmatprep.subr.mxu0 %v1574_v22  ;;  %2067 = vmatpush3.msra.mxu1 %v1591_v47 }
 0x105   :  { %2031 = vmatpush3.msra.mxu0 %v1558_v23  ;;  %2068 = vmatprep.subr.mxu1 %v1606_v49 }
 0x106   :  { %2032 = vmatprep.subr.mxu0 %v1573_v26  ;;  %2069 = vmatpush3.msra.mxu1 %v1590_v52 }
 0x107   :  { %2033 = vmatpush3.msra.mxu0 %v1557_v28  ;;  %2070 = vmatprep.subr.mxu1 %v1605_v54 }
 0x108   :  { %2034 = vmatprep.subr.mxu0 %v1572_v30  ;;  %2071 = vmatpush3.msra.mxu1 %v1589_v56 }
 0x109   :  { %2035 = vmatpush3.msra.mxu0 %v1556_v32  ;;  %2072 = vmatprep.subr.mxu1 %v1604_v58 }
 0x10a   :  { %2036 = vmatprep.subr.mxu0 %v1571_v34  ;;  %2073 = vmatpush3.msra.mxu1 %v1588_v59 }
 0x10b   :  { %2037 = vmatpush3.msra.mxu0 %v1555_v36  ;;  %2074 = vmatprep.subr.mxu1 %v1603_v60 }
 0x10c   :  { %2038 = vmatprep.subr.mxu0 %v1570_v38  ;;  %2075 = vmatpush3.msra.mxu1 %v1587_v61 }
 0x10d   :  { %2039 = vmatpush3.msra.mxu0 %v1554_v40  ;;  %2076 = vmatprep.subr.mxu1 %v1602_v62 }
 0x10e   :  { %2040 = vmatprep.subr.mxu0 %v1569_v42  ;;  %2077 = vmatpush3.msra.mxu1 %v1586_v63 }
 0x10f   :  { %2041 = vmatpush3.msra.mxu0 %v1553_v44  ;;  %2078 = vmatprep.subr.mxu1 %v1601_v0  ;;  %v284_v44 = vsub.s32 2, %v275_v12 }
 0x110   :  { %2042 = vmatprep.subr.mxu0 %v1568_v46  ;;  %2079 = vmatpush3.msra.mxu1 %v1585_v1 }
 0x111   :  { %2043 = vmatpush3.msra.mxu0 %v1552_v48  ;;  %2080 = vmatprep.subr.mxu1 %v1600_v2  ;;  %v285_v47 = vrot.slane %v272_v15, %v284_v44  ;;  %v289_v48 = vrot.slane %v272_v15, %v288_v45 }
 0x112   :  { %2044 = vmatprep.subr.mxu0 %v1567_v50  ;;  %2081 = vmatpush3.msra.mxu1 %v1584_v3 }
 0x113   :  { %2045 = vmatpush3.msra.mxu0 %v1551_v53  ;;  %2082 = vmatprep.subr.mxu1 %v1599_v6 }
 0x114   :  { %2046 = vmatprep.subr.mxu0 %v1566_v55  ;;  %2083 = vmatpush3.msra.mxu1 %v1583_v7 }
 0x115   :  { %2047 = vmatpush3.msra.mxu0 %v1550_v57  ;;  %2084 = vmatprep.subr.mxu1 %v1598_v8 }
 0x116   :  { %2085 = vmatpush3.msra.mxu1 %v1582_v9 }
 0x136   :  { %v1318_v13 = vpop.f32.mrf.mxu0 }
 0x137   :  { %v1361_v19 = vpop.f32.mrf.mxu1  ;;  %v1319_v4 = vadd.f32 %v1318_v13, %v277_v18 }
 0x138   :  { %v1320_v17 = vpop.f32.mrf.mxu0 }
 0x139   :  { %v1363_v5 = vpop.f32.mrf.mxu1  ;;  %v1321_v10 = vadd.f32 %v1320_v17, %v281_v20  ;;  %v1362_v23 = vadd.f32 %v1361_v19, %v1319_v4  ;;  %v2015_v19 = vld [vmem:[%s2607_s4] ss:$0 sm:$0xff]  ;;  %v1772_v4 = vand.u32 127, %v274_v11  ;;  %s2526_s4 = smov [#allocation10]  }
 0x13a   :  { %v1322_v21 = vpop.f32.mrf.mxu0  ;;  %s1803_s17 = sshll.u32 %s2526_s4, 4  ;;  %s1804_s17 = int_to_ptr.vmem [resolvable:$true] %s1803_s17 }
 0x13b   :  { %v1323_v24 = vadd.f32 %v1322_v21, %v277_v18  ;;  %v1365_v25 = vpop.f32.mrf.mxu1  ;;  %v1364_v26 = vadd.f32 %v1363_v5, %v1321_v10  ;;  %vm1773_vm0 = vcmp.lt.s32.totalorder %v1772_v4, 6  ;;  %s2488_s18 = scalar_lea.vmem %s1804_s17, 256  ;;  %p2493_p7 = scmp.lt.s32.totalorder %s1804_s17, %s1804_s17 }
 0x13c   :  { %v1324_v22 = vpop.f32.mrf.mxu0  ;;  %p2489_p6 = scmp.ne.s32.totalorder %s1804_s17, %s2488_s18  ;;  %p2494_p8 = scmp.lt.s32.totalorder %s2488_s18, %s2488_s18 }
 0x13d   :  { %v1325_v27 = vadd.f32 %v1324_v22, %v281_v20  ;;  %v1366_v31 = vadd.f32 %v1365_v25, %v1323_v24  ;;  %v1367_v32 = vpop.f32.mrf.mxu1 }
 0x13e   :  { %p2495_p9 = por %p2494_p8, %p2493_p7 }
 0x13f   :  { %v1368_v34 = vadd.f32 %v1367_v32, %v1325_v27 }
 0x140   :  { %p2496_p10 = pnand %p2495_p9, %p2489_p6 }
 0x176   :  { %v1404_v51 = vpop.f32.mrf.mxu0 }
 0x177   :  { %v1405_v28 = vadd.f32 %v1404_v51, %v1362_v23  ;;  %v1447_v42 = vpop.f32.mrf.mxu1 }
 0x178   :  { %v1406_v29 = vpop.f32.mrf.mxu0  ;;  %v1448_v50 = vadd.f32 %v1447_v42, %v285_v47 }
 0x179   :  { %v1407_v30 = vadd.f32 %v1406_v29, %v1364_v26  ;;  %v1542_v36 = vmax.f32 %v1405_v28, 0.0  ;;  %v1449_v43 = vpop.f32.mrf.mxu1 }
 0x17a   :  { %v1408_v33 = vpop.f32.mrf.mxu0  ;;  %v1450_v54 = vadd.f32 %v1449_v43, %v289_v48 }
 0x17b   :  { %v1543_v35 = vmax.f32 %v1407_v30, 0.0  ;;  %v1409_v37 = vadd.f32 %v1408_v33, %v1366_v31  ;;  %v1451_v46 = vpop.f32.mrf.mxu1 }
 0x17c   :  { %v1410_v38 = vpop.f32.mrf.mxu0  ;;  %v1452_v58 = vadd.f32 %v1451_v46, %v285_v47 }
 0x17d   :  { %v1411_v39 = vadd.f32 %v1410_v38, %v1368_v34  ;;  %1685 = vmatprep.mubr.f32.mxu0 %v1543_v35  ;;  %v1546_v41 = vmax.f32 %v1409_v37, 0.0  ;;  %v1453_v49 = vpop.f32.mrf.mxu1 }
 0x17e   :  { %1686 = vmatmul.mubr.f32.vlgmr.msra.gmra.mxu0 %v1542_v36  ;;  %v1454_v63 = vadd.f32 %v1453_v49, %v289_v48 }
 0x17f   :  { %v1547_v40 = vmax.f32 %v1411_v39, 0.0 }
 0x181   :  { %1690 = vmatprep.mubr.f32.mxu0 %v1547_v40 }
 0x182   :  { %1691 = vmatmul.mubr.f32.gmra.mxu0 %v1546_v41 }
 0x1b6   :  { %v1490_v52 = vpop.f32.mrf.mxu0 }
 0x1b7   :  { %v1533_v53 = vpop.f32.mrf.mxu1  ;;  %v1491_v55 = vadd.f32 %v1490_v52, %v1448_v50 }
 0x1b8   :  { %v1492_v56 = vpop.f32.mrf.mxu0 }
 0x1b9   :  { %v1535_v57 = vpop.f32.mrf.mxu1  ;;  %v1493_v59 = vadd.f32 %v1492_v56, %v1450_v54  ;;  %v1534_v60 = vadd.f32 %v1533_v53, %v1491_v55 }
 0x1ba   :  { %v1494_v61 = vpop.f32.mrf.mxu0 }
 0x1bb   :  { %v1537_v62 = vpop.f32.mrf.mxu1  ;;  %v1536_v0 = vadd.f32 %v1535_v57, %v1493_v59  ;;  %v1495_v1 = vadd.f32 %v1494_v61, %v1452_v58  ;;  %v1544_v7 = vmax.f32 %v1534_v60, 0.0 }
 0x1bc   :  { %v1496_v2 = vpop.f32.mrf.mxu0 }
 0x1bd   :  { %v1545_v3 = vmax.f32 %v1536_v0, 0.0  ;;  %v1497_v6 = vadd.f32 %v1496_v2, %v1454_v63  ;;  %v1538_v8 = vadd.f32 %v1537_v62, %v1495_v1  ;;  %v1539_v9 = vpop.f32.mrf.mxu1 }
 0x1bf   :  { %v1540_v12 = vadd.f32 %v1539_v9, %v1497_v6  ;;  %1760 = vmatprep.mubr.f32.mxu1 %v1545_v3  ;;  %v1548_v14 = vmax.f32 %v1538_v8, 0.0 }
 0x1c0   :  { %1761 = vmatmul.mubr.f32.vlgmr.msra.gmra.mxu1 %v1544_v7 }
 0x1c1   :  { %v1549_v13 = vmax.f32 %v1540_v12, 0.0 }
 0x1c3   :  { %1765 = vmatprep.mubr.f32.mxu1 %v1549_v13 }
 0x1c4   :  { %1766 = vmatmul.mubr.f32.gmra.mxu1 %v1548_v14 }
 0x23e   :  { %v2048_v15 = vpop.f32.mrf.mxu0 }
 0x240   :  { %v2049_v16 = vpop.f32.mrf.mxu0 }
 0x241   :  { %v2050_v18 = vadd.f32 %v2049_v16, %v2048_v15 }
 0x242   :  { %v2051_v17 = vpop.f32.mrf.mxu0 }
 0x243   :  { %v1688_v10 = vadd.f32 %v2050_v18, %v2015_v19 }
 0x244   :  { %v2052_v20 = vpop.f32.mrf.mxu0 }
 0x245   :  { %v2053_v22 = vadd.f32 %v2052_v20, %v2051_v17 }
 0x247   :  { %v1693_v26 = vadd.f32 %v2053_v22, %v2015_v19 }
 0x280   :  { %v2086_v21 = vpop.f32.mrf.mxu1 }
 0x282   :  { %v2087_v5 = vpop.f32.mrf.mxu1 }
 0x283   :  { %v2088_v23 = vadd.f32 %v2087_v5, %v2086_v21 }
 0x284   :  { %v2089_v24 = vpop.f32.mrf.mxu1 }
 0x285   :  { %v1763_v25 = vadd.f32 %v2088_v23, %v1688_v10 }
 0x286   :  { %v2090_v51 = vpop.f32.mrf.mxu1 }
 0x287   :  { %v2091_v27 = vadd.f32 %v2090_v51, %v2089_v24  ;;  %v1774_v28 = vsel %vm1773_vm0, %v1763_v25, -1e+30 }
 0x288   :  { %1776 = vmax.xlane.f32.xlu0 %v1774_v28 }
 0x289   :  { %v1768_v29 = vadd.f32 %v2091_v27, %v1693_v26 }
 0x28b   :  { %v1775_v30 = vsel %vm1773_vm0, %v1768_v29, -1e+30 }
 0x28c   :  { %1778 = vmax.xlane.f32.xlu0 %v1775_v30 }
 0x311   :  { %v1777_v31 = vpop.xlane.xlu0 %1776 }
 0x312   :  { %v1780_v32 = vsub.f32 %v1774_v28, %v1777_v31 }
 0x314   :  { %v1782_v33 = vmul.f32 1.442695, %v1780_v32 }
 0x315   :  { %v1779_v34 = vpop.xlane.xlu0 %1778 }
 0x316   :  { %v1781_v11 = vsub.f32 %v1775_v30, %v1779_v34  ;;  %2400 = vpow2.f32 %v1782_v33 }
 0x318   :  { %v1784_v35 = vmul.f32 1.442695, %v1781_v11 }
 0x31a   :  { %2402 = vpow2.f32 %v1784_v35 }
 0x323   :  { %v2401_v36 = vpop.eup %2400 }
 0x324   :  { %1786 = vadd.xlane.f32.xlu1 %v2401_v36 }
 0x327   :  { %v2403_v37 = vpop.eup %2402 }
 0x328   :  { %1788 = vadd.xlane.f32.xlu1 %v2403_v37 }
 0x3ad   :  { %v1787_v38 = vpop.xlane.xlu1 %1786 }
 0x3ae   :  { %2404 = vlog2.f32 %v1787_v38 }
 0x3b1   :  { %v1789_v39 = vpop.xlane.xlu1 %1788 }
 0x3b2   :  { %2406 = vlog2.f32 %v1789_v39 }
 0x3bb   :  { %v2405_v40 = vpop.eup %2404 }
 0x3bc   :  { %v1791_v41 = vmul.f32 0.6931472, %v2405_v40 }
 0x3be   :  { %v1794_v42 = vsub.f32 %v1780_v32, %v1791_v41 }
 0x3bf   :  { %v2407_v43 = vpop.eup %2406 }
 0x3c0   :  { %v1793_v44 = vmul.f32 0.6931472, %v2407_v43  ;;  %1796 = vst [vmem:[#allocation10] sm:$0xff] %v1794_v42 }
 0x3c2   :  { %v1795_v45 = vsub.f32 %v1781_v11, %v1793_v44 }
 0x3c4   :  { %1797 = vst [vmem:[#allocation10 + $0x8] sm:$0xff] %v1795_v45 }
 0x3c5   :  { %2499 = shalt.err (!%p2496_p10)
}
 0x3c6   :  { %1809 = dma.vmem_to_hbm [thread:$0]  %s1804_s17, 256, %s2608_s5, [#allocation4], %s2524_s0, %s2524_s0, %s2525_s14  }
 0x3c7   :  { %2514 = dma.done.wait [#allocation4], 256  }
 0x3c8   :  { %2515 = vsyncadd [#allocation4], 4294967040 }
 0x3c9   :  { %1813 = vsyncpa [#allocation3], 1 }
 0x3ca   :  { %1814 = vsyncpa [#allocation6], 1 }
 0x3cb   :  { %1815 = vsyncpa [#allocation9], 1 }
 0x3cc   :  { %1816 = vsyncpa [#allocation4], 1 }

</bundles_post_ra>
